<compile_context>
chip_gen: v6e
topology: v6e:2x2x1
jax: 0.10.0
libtpu: 0.0.40
codegen_flags: <defaults>
</compile_context>

<pallas_src>
import jax
import jax.numpy as jnp
from jax.experimental import pallas as pl
from jax.experimental.pallas import tpu as pltpu


def _round_up(x, m):
    return ((x + m - 1) // m) * m


def _device_info():
    """(num_tensorcores_per_chip, has_bf16_vpu) — conservative defaults on unknowns."""
    try:
        kind = jax.devices()[0].device_kind.lower()
    except Exception:
        kind = ""
    has_bf16_vpu = ("v6" in kind) or ("v7" in kind)
    num_tc = 2 if "v7" in kind else 1
    return num_tc, has_bf16_vpu


def _discriminator_kernel(x_ref, w1_ref, b1_ref, w2_ref, b2_ref, o_ref):
    # LeakyReLU(0.2) on the bf16 input (VPU); max(v, 0.2v) avoids the compare.
    x = x_ref[...]
    x = jnp.maximum(x, 0.2 * x)
    # Linear(D_in, 300): bf16 operands into the MXU, f32 accumulation.
    h = jnp.dot(x, w1_ref[...], preferred_element_type=jnp.float32)
    # Epilogue precision follows b1's dtype: bf16 on v6e/v7x (bf16 VPU),
    # f32 on v5e (no bf16 VPU -> no win from narrowing).
    h = h.astype(b1_ref.dtype) + b1_ref[...]
    h = jnp.maximum(h, 0.2 * h)
    # Linear(300, D_out): bf16 operands, f32 accumulation, f32 bias add.
    o = jnp.dot(h.astype(jnp.bfloat16), w2_ref[...],
                preferred_element_type=jnp.float32) + b2_ref[...]
    o_ref[...] = o.astype(o_ref.dtype)


def prepare_discriminator_params(w1, b1, w2, b2, *, bf16_epilogue=None):
    """One-time padding + casting of parameters (hoisted out of the forward pass).

    w1: [D_in, 300], b1: [300], w2: [300, D_out], b2: [D_out].
    """
    if bf16_epilogue is None:
        _, bf16_epilogue = _device_info()
    D_in, D_hid = w1.shape
    D_out = w2.shape[1]
    D_in_p = _round_up(D_in, 128)
    D_hid_p = _round_up(D_hid, 128)   # 300 -> 384
    D_out_p = _round_up(D_out, 128)   # e.g. 8 -> 128 (lane-dense output stores)

    b1_dtype = jnp.bfloat16 if bf16_epilogue else jnp.float32
    w1_p = jnp.zeros((D_in_p, D_hid_p), jnp.bfloat16).at[:D_in, :D_hid].set(
        w1.astype(jnp.bfloat16))
    b1_p = jnp.zeros((1, D_hid_p), b1_dtype).at[:, :D_hid].set(
        b1.astype(b1_dtype).reshape(1, D_hid))
    w2_p = jnp.zeros((D_hid_p, D_out_p), jnp.bfloat16).at[:D_hid, :D_out].set(
        w2.astype(jnp.bfloat16))
    b2_p = jnp.zeros((1, D_out_p), jnp.float32).at[:, :D_out].set(
        b2.astype(jnp.float32).reshape(1, D_out))
    return {"w1": w1_p, "b1": b1_p, "w2": w2_p, "b2": b2_p,
            "dims": (D_in, D_hid, D_out)}


def discriminator_forward(x, params, *, tile_m=None, out_dtype=jnp.float32):
    """x: [B, D_in]; params: output of prepare_discriminator_params. Returns [B, D_out]."""
    B, D_in = x.shape
    pD_in, _, D_out = params["dims"]
    assert D_in == pD_in, "input feature dim does not match prepared params"
    w1_p, b1_p, w2_p, b2_p = params["w1"], params["b1"], params["w2"], params["b2"]
    D_in_p, D_hid_p = w1_p.shape
    D_out_p = w2_p.shape[1]

    # Generation-aware batch tile: single big tile on single-TC chips; only
    # split across TensorCores (v7x) when each half is >= 256 rows.
    num_tc, _ = _device_info()
    if tile_m is None:
        if num_tc >= 2 and B >= 512:
            tile_m = min(512, _round_up(pl.cdiv(B, num_tc), 8))
        else:
            tile_m = min(512, _round_up(max(B, 1), 8))
    tile_m = max(8, _round_up(tile_m, 8))
    B_pad = _round_up(B, tile_m)
    num_tiles = B_pad // tile_m

    # bf16 input halves the dominant HBM stream; skip the pad copy when the
    # shapes are already aligned.
    if B_pad == B and D_in_p == D_in:
        x_p = x.astype(jnp.bfloat16)
    else:
        x_p = jnp.zeros((B_pad, D_in_p), jnp.bfloat16).at[:B, :D_in].set(
            x.astype(jnp.bfloat16))

    # TODO(synk): if D_in grows large enough that resident W1 nears the scoped
    # VMEM limit (half as far away on v7x's 64 MiB), set
    # pipeline_mode=pl.Buffered(1) on the constant-index W1/W2 specs, raise
    # vmem_limit_bytes, or add a K grid axis with an f32 accumulator scratch.
    out_p = pl.pallas_call(
        _discriminator_kernel,
        out_shape=jax.ShapeDtypeStruct((B_pad, D_out_p), out_dtype),
        grid_spec=pl.GridSpec(
            grid=(num_tiles,),
            in_specs=[
                pl.BlockSpec((tile_m, D_in_p), lambda i: (i, 0)),    # x tile
                pl.BlockSpec((D_in_p, D_hid_p), lambda i: (0, 0)),   # W1 (resident)
                pl.BlockSpec((1, D_hid_p), lambda i: (0, 0)),        # b1
                pl.BlockSpec((D_hid_p, D_out_p), lambda i: (0, 0)),  # W2 (resident)
                pl.BlockSpec((1, D_out_p), lambda i: (0, 0)),        # b2
            ],
            out_specs=pl.BlockSpec((tile_m, D_out_p), lambda i: (i, 0)),
        ),
        compiler_params=pltpu.CompilerParams(
            dimension_semantics=("parallel",),
        ),
    )(x_p, w1_p, b1_p, w2_p, b2_p)

    # Slice away batch / output-feature padding.
    return out_p[:B, :D_out]


def init_discriminator_params(key, input_dims, output_dims, hidden=300):
    """Deterministic init mimicking torch.nn.Linear default (U[-1/sqrt(fan_in), 1/sqrt(fan_in)])."""
    k1, k2, k3, k4 = jax.random.split(key, 4)
    bound1 = 1.0 / jnp.sqrt(jnp.float32(input_dims))
    bound2 = 1.0 / jnp.sqrt(jnp.float32(hidden))
    w1 = jax.random.uniform(k1, (input_dims, hidden), jnp.float32, -bound1, bound1)
    b1 = jax.random.uniform(k2, (hidden,), jnp.float32, -bound1, bound1)
    w2 = jax.random.uniform(k3, (hidden, output_dims), jnp.float32, -bound2, bound2)
    b2 = jax.random.uniform(k4, (output_dims,), jnp.float32, -bound2, bound2)
    return w1, b1, w2, b2


def _reference_forward(x, w1, b1, w2, b2):
    def lrelu(v):
        return jnp.where(v > 0, v, 0.2 * v)
    h = lrelu(x) @ w1 + b1
    h = lrelu(h)
    return h @ w2 + b2


if __name__ == "__main__":
    key = jax.random.PRNGKey(0)
    batch = 8
    input_dims = 32
    output_dims = 8

    kx, kp = jax.random.split(key)
    x = jax.random.normal(kx, (batch, input_dims), jnp.float32)
    w1, b1, w2, b2 = init_discriminator_params(kp, input_dims, output_dims)

    params = prepare_discriminator_params(w1, b1, w2, b2)
    out = discriminator_forward(x, params)
    out = jax.block_until_ready(out)

    # f32 reference; kernel uses bf16 inputs/weights at the MXU (and possibly a
    # bf16 hidden epilogue) with f32 accumulation, so allow a bf16-level tolerance.
    ref = _reference_forward(x, w1, b1, w2, b2)
    assert out.shape == (batch, output_dims)
    assert jnp.allclose(out, ref, atol=5e-2, rtol=5e-2), "mismatch vs reference"

    print("KERNEL_OK")
</pallas_src>

<mosaic_0001>
module attributes {stable_mosaic.version = 11 : i64} {
  func.func @_discriminator_kernel(%arg0: i32, %arg1: memref<8x128xbf16, #tpu.memory_space<vmem>>, %arg2: memref<128x384xbf16, #tpu.memory_space<vmem>>, %arg3: memref<1x384xf32, #tpu.memory_space<vmem>>, %arg4: memref<384x128xbf16, #tpu.memory_space<vmem>>, %arg5: memref<1x128xf32, #tpu.memory_space<vmem>>, %arg6: memref<8x128xf32, #tpu.memory_space<vmem>>) attributes {dimension_semantics = [#tpu.dimension_semantics<parallel>], iteration_bounds = array<i64: 1>, scalar_prefetch = 0 : i64, scratch_operands = 0 : i64, tpu.core_type = #tpu.core_type<tc>, window_params = [{transform_indices = @transform_0, window_bounds = array<i64: 8, 128>}, {pipeline_mode = #tpu.pipeline_mode<synchronous>, transform_indices = @transform_1, window_bounds = array<i64: 128, 384>}, {pipeline_mode = #tpu.pipeline_mode<synchronous>, transform_indices = @transform_2, window_bounds = array<i64: 1, 384>}, {pipeline_mode = #tpu.pipeline_mode<synchronous>, transform_indices = @transform_3, window_bounds = array<i64: 384, 128>}, {pipeline_mode = #tpu.pipeline_mode<synchronous>, transform_indices = @transform_4, window_bounds = array<i64: 1, 128>}, {transform_indices = @transform_5, window_bounds = array<i64: 8, 128>}]} {
    %c0 = arith.constant 0 : index
    %c0_0 = arith.constant 0 : index
    %0 = vector.load %arg1[%c0, %c0_0] : memref<8x128xbf16, #tpu.memory_space<vmem>>, vector<8x128xbf16>
    %cst = arith.constant 2.001950e-01 : bf16
    %1 = vector.broadcast %cst : bf16 to vector<8x128xbf16>
    %2 = arith.mulf %1, %0 : vector<8x128xbf16>
    %3 = arith.maximumf %0, %2 : vector<8x128xbf16>
    %c0_1 = arith.constant 0 : index
    %c0_2 = arith.constant 0 : index
    %4 = vector.load %arg2[%c0_1, %c0_2] : memref<128x384xbf16, #tpu.memory_space<vmem>>, vector<128x384xbf16>
    %cst_3 = arith.constant dense<0.000000e+00> : vector<8x384xf32>
    %5 = tpu.matmul %3, %4, %cst_3 {dimension_numbers = #tpu.dot_dimension_numbers<[1], [0], [0], [1], [0, 0, 1, 1], [], []>} : vector<8x128xbf16>, vector<128x384xbf16>, vector<8x384xf32> -> vector<8x384xf32>
    %c0_4 = arith.constant 0 : index
    %c0_5 = arith.constant 0 : index
    %6 = vector.load %arg3[%c0_4, %c0_5] : memref<1x384xf32, #tpu.memory_space<vmem>>, vector<1x384xf32>
    %7 = vector.broadcast %6 : vector<1x384xf32> to vector<8x384xf32>
    %8 = arith.addf %5, %7 : vector<8x384xf32>
    %cst_6 = arith.constant 2.000000e-01 : f32
    %9 = vector.broadcast %cst_6 : f32 to vector<8x384xf32>
    %10 = arith.mulf %9, %8 : vector<8x384xf32>
    %11 = arith.maximumf %8, %10 : vector<8x384xf32>
    %12 = arith.truncf %11 : vector<8x384xf32> to vector<8x384xbf16>
    %c0_7 = arith.constant 0 : index
    %c0_8 = arith.constant 0 : index
    %13 = vector.load %arg4[%c0_7, %c0_8] : memref<384x128xbf16, #tpu.memory_space<vmem>>, vector<384x128xbf16>
    %cst_9 = arith.constant dense<0.000000e+00> : vector<8x128xf32>
    %14 = tpu.matmul %12, %13, %cst_9 {dimension_numbers = #tpu.dot_dimension_numbers<[1], [0], [0], [1], [0, 0, 1, 1], [], []>} : vector<8x384xbf16>, vector<384x128xbf16>, vector<8x128xf32> -> vector<8x128xf32>
    %c0_10 = arith.constant 0 : index
    %c0_11 = arith.constant 0 : index
    %15 = vector.load %arg5[%c0_10, %c0_11] : memref<1x128xf32, #tpu.memory_space<vmem>>, vector<1x128xf32>
    %16 = vector.broadcast %15 : vector<1x128xf32> to vector<8x128xf32>
    %17 = arith.addf %14, %16 : vector<8x128xf32>
    %c0_12 = arith.constant 0 : index
    %c0_13 = arith.constant 0 : index
    %18 = vector.load %arg6[%c0_12, %c0_13] : memref<8x128xf32, #tpu.memory_space<vmem>>, vector<8x128xf32>
    tpu.vector_store %arg6[%c0_12, %c0_13], %17 {strides = array<i32>} : memref<8x128xf32, #tpu.memory_space<vmem>>, vector<8x128xf32>,
    return
  }
  func.func @transform_0(%arg0: i32) -> (i32, i32) {
    %c0_i32 = arith.constant 0 : i32
    %c0_i32_0 = arith.constant 0 : i32
    return %arg0, %c0_i32 : i32, i32
  }
  func.func @transform_1(%arg0: i32) -> (i32, i32) {
    %c0_i32 = arith.constant 0 : i32
    %c0_i32_0 = arith.constant 0 : i32
    %c0_i32_1 = arith.constant 0 : i32
    return %c0_i32, %c0_i32_0 : i32, i32
  }
  func.func @transform_2(%arg0: i32) -> (i32, i32) {
    %c0_i32 = arith.constant 0 : i32
    %c0_i32_0 = arith.constant 0 : i32
    %c0_i32_1 = arith.constant 0 : i32
    return %c0_i32, %c0_i32_0 : i32, i32
  }
  func.func @transform_3(%arg0: i32) -> (i32, i32) {
    %c0_i32 = arith.constant 0 : i32
    %c0_i32_0 = arith.constant 0 : i32
    %c0_i32_1 = arith.constant 0 : i32
    return %c0_i32, %c0_i32_0 : i32, i32
  }
  func.func @transform_4(%arg0: i32) -> (i32, i32) {
    %c0_i32 = arith.constant 0 : i32
    %c0_i32_0 = arith.constant 0 : i32
    %c0_i32_1 = arith.constant 0 : i32
    return %c0_i32, %c0_i32_0 : i32, i32
  }
  func.func @transform_5(%arg0: i32) -> (i32, i32) {
    %c0_i32 = arith.constant 0 : i32
    %c0_i32_0 = arith.constant 0 : i32
    return %arg0, %c0_i32 : i32, i32
  }
}

</mosaic_0001>

<bundles_post_ra>
// kernel: tpu_custom_call.1
= control target key start
LH: loop header
LB: loop body
LE: loop exit
PB: predicated region body
PF: predicated region fallthrough
CT: control target
= control target key end

     0   :  { %10 = vsyncpa [#allocation3], 0  ;;  %s989_s0 = inlined_call_operand.hbm [shape: bf16[8,128], index: 0, kind: input, shape index: {}]   ;;  %s990_s1 = inlined_call_operand.hbm [shape: bf16[128,384], index: 1, kind: input, shape index: {}]   ;;  %s991_s2 = inlined_call_operand.vmem [shape: f32[1,384], index: 2, kind: input, shape index: {}]   ;;  %s992_s3 = inlined_call_operand.hbm [shape: bf16[384,128], index: 3, kind: input, shape index: {}]   ;;  %s993_s4 = inlined_call_operand.vmem [shape: f32[1,128], index: 4, kind: input, shape index: {}]   ;;  %s994_s5 = inlined_call_operand.hbm [shape: f32[8,128], index: 5, kind: output, shape index: {}]  }
   0x1   :  { %11 = vsyncpa [#allocation6], 0 }
   0x2   :  { %12 = vsyncpa [#allocation4], 0  ;;  %s910_s18 = smov [#allocation5]  }
   0x3   :  { %s28_s19 = sshll.u32 %s910_s18, 4  ;;  %s29_s19 = int_to_ptr.vmem [resolvable:$true] %s28_s19 }
   0x4   :  { %s832_s20 = scalar_lea.vmem %s29_s19, 3072  ;;  %p837_p1 = scmp.lt.s32.totalorder %s29_s19, %s29_s19 }
   0x5   :  { %p833_p0 = scmp.ne.s32.totalorder %s29_s19, %s832_s20  ;;  %p838_p2 = scmp.lt.s32.totalorder %s832_s20, %s832_s20 }
   0x7   :  { %p839_p3 = por %p838_p2, %p837_p1 }
   0x9   :  { %p840_p4 = pnand %p839_p3, %p833_p0 }
   0xb   :  { %843 = shalt.err (!%p840_p4)
}
   0xc   :  { %s911_s21 = smov 192   ;;  %s912_s22 = smov 12  }
   0xd   :  { %34 = dma.hbm_to_vmem [thread:$0]  %s990_s1, 3072, %s29_s19, [#allocation6], %s911_s21, %s911_s21, %s912_s22  }
   0xe   :  { %s913_s25 = smov [#allocation2]   ;;  %s914_s27 = smov [#allocation7]  }
   0xf   :  { %s19_s26 = sshll.u32 %s913_s25, 4  ;;  %s42_s28 = sshll.u32 %s914_s27, 4  ;;  %s20_s26 = int_to_ptr.vmem [resolvable:$true] %s19_s26  ;;  %s43_s28 = int_to_ptr.vmem [resolvable:$true] %s42_s28 }
  0x10   :  { %s852_s29 = scalar_lea.vmem %s20_s26, 64  ;;  %p857_p6 = scmp.lt.s32.totalorder %s20_s26, %s20_s26 }
  0x11   :  { %p853_p5 = scmp.ne.s32.totalorder %s20_s26, %s852_s29  ;;  %p858_p7 = scmp.lt.s32.totalorder %s852_s29, %s852_s29 }
  0x13   :  { %p859_p8 = por %p858_p7, %p857_p6 }
  0x15   :  { %p860_p9 = pnand %p859_p8, %p853_p5 }
  0x17   :  { %863 = shalt.err (!%p860_p9)
}
  0x18   :  { %22 = dma.hbm_to_vmem [thread:$0]  %s989_s0, 64, %s20_s26, [#allocation3]  }
  0x19   :  { %s872_s7 = scalar_lea.vmem %s43_s28, 3072  ;;  %p877_p11 = scmp.lt.s32.totalorder %s43_s28, %s43_s28 }
  0x1a   :  { %p873_p10 = scmp.ne.s32.totalorder %s43_s28, %s872_s7  ;;  %p878_p12 = scmp.lt.s32.totalorder %s872_s7, %s872_s7 }
  0x1c   :  { %p879_p13 = por %p878_p12, %p877_p11 }
  0x1e   :  { %p880_p0 = pnand %p879_p13, %p873_p10 }
  0x20   :  { %883 = shalt.err (!%p880_p0)
}
  0x21   :  { %s915_s1 = smov 64   ;;  %s916_s8 = smov 4  }
  0x22   :  { %48 = dma.hbm_to_vmem [thread:$0]  %s992_s3, 3072, %s43_s28, [#allocation6], %s915_s1, %s915_s1, %s916_s8  }
  0x23   :  { %904 = dma.done.wait [#allocation3], 64  }
  0x24   :  { %905 = vsyncadd [#allocation3], 4294967232 }
  0x25   :  { %906 = dma.done.wait [#allocation6], 6144  }
  0x26   :  { %907 = vsyncadd [#allocation6], 4294961152  ;;  %v917_v0 = vmov 0.0   ;;  %vm918_vm0 = vmmov 0   ;;  %v919_v1 = vmov 0   ;;  %v801_v28 = vld [vmem:[#allocation7 + $0x78] sm:$0xff]   ;;  %v99_v53 = vlaneseq }
  0x27   :  { %717 = vmatprep.subr.bf16.mxu1 %v917_v0  ;;  %733 = vmatprep.mubr.msk.bf16.mxu1 %vm918_vm0, %v917_v0  ;;  %v768_v2 = vld [vmem:[#allocation5 + $0xac] ss:$12 sps:$4 sm:$0xff]   ;;  %v770_v3 = vld [vmem:[#allocation5 + $0xb0] ss:$12 sps:$4 sm:$0xff]   ;;  %v771_v4 = vld [vmem:[#allocation5 + $0xa8] ss:$12 sps:$4 sm:$0xff]  }
  0x28   :  { %274 = vmatprep.mubr.bf16.mxu0 %v919_v1  ;;  %242 = vmatprep.subr.bf16.mxu0 %v768_v2  ;;  %v772_v5 = vld [vmem:[#allocation5 + $0x94] ss:$12 sps:$4 sm:$0xff]   ;;  %v774_v6 = vld [vmem:[#allocation5 + $0x98] ss:$12 sps:$4 sm:$0xff]   ;;  %v775_v7 = vld [vmem:[#allocation5 + $0x90] ss:$12 sps:$4 sm:$0xff]  }
  0x29   :  { %718 = vmatpush3.bf16.msra.mxu1 %v770_v3  ;;  %243 = vmatpush1.bf16.msra.mxu0 %v771_v4  ;;  %v776_v8 = vld [vmem:[#allocation5 + $0x7c] ss:$12 sps:$4 sm:$0xff]   ;;  %v778_v9 = vld [vmem:[#allocation5 + $0x80] ss:$12 sps:$4 sm:$0xff]   ;;  %v779_v10 = vld [vmem:[#allocation5 + $0x78] ss:$12 sps:$4 sm:$0xff]  }
  0x2a   :  { %719 = vmatprep.subr.bf16.mxu1 %v917_v0  ;;  %244 = vmatprep.subr.bf16.mxu0 %v772_v5  ;;  %v780_v11 = vld [vmem:[#allocation5 + $0x64] ss:$12 sps:$4 sm:$0xff]   ;;  %v782_v12 = vld [vmem:[#allocation5 + $0x68] ss:$12 sps:$4 sm:$0xff]   ;;  %v783_v13 = vld [vmem:[#allocation5 + $0x60] ss:$12 sps:$4 sm:$0xff]  }
  0x2b   :  { %v784_v14 = vld [vmem:[#allocation5 + $0x4c] ss:$12 sps:$4 sm:$0xff]   ;;  %v786_v15 = vld [vmem:[#allocation5 + $0x50] ss:$12 sps:$4 sm:$0xff]   ;;  %v787_v16 = vld [vmem:[#allocation5 + $0x48] ss:$12 sps:$4 sm:$0xff]  }
  0x2c   :  { %v788_v17 = vld [vmem:[#allocation5 + $0x34] ss:$12 sps:$4 sm:$0xff]   ;;  %v790_v18 = vld [vmem:[#allocation5 + $0x38] ss:$12 sps:$4 sm:$0xff]   ;;  %v791_v19 = vld [vmem:[#allocation5 + $0x30] ss:$12 sps:$4 sm:$0xff]  }
  0x2d   :  { %720 = vmatpush3.bf16.msra.mxu1 %v774_v6  ;;  %245 = vmatpush1.bf16.msra.mxu0 %v775_v7  ;;  %v792_v20 = vld [vmem:[#allocation5 + $0x1c] ss:$12 sps:$4 sm:$0xff]   ;;  %v794_v21 = vld [vmem:[#allocation5 + $0x20] ss:$12 sps:$4 sm:$0xff]   ;;  %v795_v23 = vld [vmem:[#allocation5 + $0x18] ss:$12 sps:$4 sm:$0xff]  }
  0x2e   :  { %721 = vmatprep.subr.bf16.mxu1 %v917_v0  ;;  %246 = vmatprep.subr.bf16.mxu0 %v776_v8  ;;  %v62_v22 = vld [vmem:[#allocation2] sm:$0xf]  ;;  %v796_v24 = vld [vmem:[#allocation5 + $0x4] ss:$12 sps:$4 sm:$0xff]   ;;  %v798_v26 = vld [vmem:[#allocation5 + $0x8] ss:$12 sps:$4 sm:$0xff]  }
  0x2f   :  { %v63_v25 = vmul.bf16 1045249613, %v62_v22  ;;  %v799_v27 = vld [vmem:[#allocation5] ss:$12 sps:$4 sm:$0xff]   ;;  %v800_v30 = vld [vmem:[#allocation7 + $0xb8] sm:$0xff]   ;;  %v804_v32 = vld [vmem:[#allocation7 + $0x70] sm:$0xff]  }
  0x30   :  { %v802_v31 = vld [vmem:[#allocation7 + $0x38] sm:$0xff]   ;;  %v803_v33 = vld [vmem:[#allocation7 + $0xb0] sm:$0xff]   ;;  %v807_v35 = vld [vmem:[#allocation7 + $0x68] sm:$0xff]   ;;  %v100_v54 = vshrl.u32 %v99_v53, 7  ;;  %s920_s12 = smov [#allocation8]  }
  0x31   :  { %722 = vmatpush3.bf16.msra.mxu1 %v778_v9  ;;  %247 = vmatpush1.bf16.msra.mxu0 %v779_v10  ;;  %v64_v29 = vmax.bf16 %v63_v25, %v62_v22  ;;  %v805_v34 = vld [vmem:[#allocation7 + $0x30] sm:$0xff]   ;;  %v806_v36 = vld [vmem:[#allocation7 + $0xa8] sm:$0xff]   ;;  %v810_v38 = vld [vmem:[#allocation7 + $0x60] sm:$0xff]   ;;  %s618_s13 = sshll.u32 %s920_s12, 4  ;;  %s619_s13 = int_to_ptr.vmem [resolvable:$true] %s618_s13 }
  0x32   :  { %723 = vmatprep.subr.bf16.mxu1 %v917_v0  ;;  %248 = vmatprep.subr.bf16.mxu0 %v780_v11  ;;  %v808_v37 = vld [vmem:[#allocation7 + $0x28] sm:$0xff]   ;;  %v809_v39 = vld [vmem:[#allocation7 + $0xa0] sm:$0xff]   ;;  %v813_v41 = vld [vmem:[#allocation7 + $0x58] sm:$0xff]   ;;  %v109_v55 = vsub.s32 2, %v100_v54  ;;  %v101_v57 = vsub.s32 0, %v100_v54  ;;  %v105_v58 = vsub.s32 1, %v100_v54  ;;  %p889_p2 = scmp.lt.s32.totalorder %s619_s13, %s619_s13 }
  0x33   :  { %v811_v40 = vld [vmem:[#allocation7 + $0x20] sm:$0xff]   ;;  %v812_v42 = vld [vmem:[#allocation7 + $0x98] sm:$0xff]   ;;  %v815_v44 = vld [vmem:[#allocation7 + $0x90] sm:$0xff]   ;;  %s884_s14 = scalar_lea.vmem %s619_s13, 128 }
  0x34   :  { %v814_v43 = vld [vmem:[#allocation7 + $0x18] sm:$0xff]   ;;  %v816_v45 = vld [vmem:[#allocation7 + $0x50] sm:$0xff]   ;;  %v818_v47 = vld [vmem:[#allocation7 + $0x88] sm:$0xff]   ;;  %p885_p1 = scmp.ne.s32.totalorder %s619_s13, %s884_s14  ;;  %p890_p3 = scmp.lt.s32.totalorder %s884_s14, %s884_s14 }
  0x35   :  { %724 = vmatpush3.bf16.msra.mxu1 %v782_v12  ;;  %249 = vmatpush1.bf16.msra.mxu0 %v783_v13  ;;  %v817_v46 = vld [vmem:[#allocation7 + $0x10] sm:$0xff]   ;;  %v819_v48 = vld [vmem:[#allocation7 + $0x48] sm:$0xff]   ;;  %v821_v50 = vld [vmem:[#allocation7 + $0x80] sm:$0xff]  }
  0x36   :  { %725 = vmatprep.subr.bf16.mxu1 %v917_v0  ;;  %250 = vmatprep.subr.bf16.mxu0 %v784_v14  ;;  %v820_v49 = vld [vmem:[#allocation7 + $0x8] sm:$0xff]   ;;  %v822_v51 = vld [vmem:[#allocation7 + $0x40] sm:$0xff]   ;;  %v97_v56 = vld [vmem:[%s991_s2] sm:$0x7]  ;;  %p891_p4 = por %p890_p3, %p889_p2 }
  0x37   :  { %v823_v52 = vld [vmem:[#allocation7] sm:$0xff]   ;;  %v110_v59 = vrot.slane %v97_v56, %v109_v55  ;;  %v102_v60 = vrot.slane %v97_v56, %v101_v57  ;;  %v106_v62 = vrot.slane %v97_v56, %v105_v58  ;;  %v652_v22 = vld [vmem:[%s993_s4] ss:$0 sm:$0xff] }
  0x38   :  { %p892_p5 = pnand %p891_p4, %p885_p1 }
  0x39   :  { %726 = vmatpush3.bf16.msra.mxu1 %v786_v15  ;;  %251 = vmatpush1.bf16.msra.mxu0 %v787_v16 }
  0x3a   :  { %727 = vmatprep.subr.bf16.mxu1 %v917_v0  ;;  %252 = vmatprep.subr.bf16.mxu0 %v788_v17 }
  0x3d   :  { %728 = vmatpush3.bf16.msra.mxu1 %v790_v18  ;;  %253 = vmatpush1.bf16.msra.mxu0 %v791_v19 }
  0x3e   :  { %729 = vmatprep.subr.bf16.mxu1 %v917_v0  ;;  %254 = vmatprep.subr.bf16.mxu0 %v792_v20 }
  0x41   :  { %730 = vmatpush3.bf16.msra.mxu1 %v794_v21  ;;  %255 = vmatpush1.bf16.msra.mxu0 %v795_v23 }
  0x42   :  { %731 = vmatprep.subr.bf16.mxu1 %v917_v0  ;;  %256 = vmatprep.subr.bf16.mxu0 %v796_v24 }
  0x45   :  { %732 = vmatpush3.bf16.msra.mxu1 %v798_v26  ;;  %257 = vmatpush1.bf16.msra.mxu0 %v799_v27 }
  0x46   :  { %737 = vmatprep.subr.bf16.mxu1 %v917_v0  ;;  %686 = vmatprep.subr.bf16.mxu0 %v801_v28 }
  0x48   :  { %734 = vmatmul.mubr.bf16.vlgmr.msra.gmra.mxu1 %v64_v29  ;;  %275 = vmatmul.mubr.bf16.vlgmr.msra.gmra.mxu0 %v64_v29 }
  0x49   :  { %738 = vmatpush3.bf16.msra.mxu1 %v800_v30  ;;  %687 = vmatpush3.bf16.msra.mxu0 %v802_v31 }
  0x4a   :  { %739 = vmatprep.subr.bf16.mxu1 %v917_v0  ;;  %688 = vmatprep.subr.bf16.mxu0 %v804_v32 }
  0x4b   :  { %753 = vmatprep.mubr.msk.bf16.mxu1 %vm918_vm0, %v917_v0 }
  0x4d   :  { %740 = vmatpush3.bf16.msra.mxu1 %v803_v33  ;;  %689 = vmatpush3.bf16.msra.mxu0 %v805_v34 }
  0x4e   :  { %741 = vmatprep.subr.bf16.mxu1 %v917_v0  ;;  %690 = vmatprep.subr.bf16.mxu0 %v807_v35 }
  0x51   :  { %742 = vmatpush3.bf16.msra.mxu1 %v806_v36  ;;  %691 = vmatpush3.bf16.msra.mxu0 %v808_v37 }
  0x52   :  { %743 = vmatprep.subr.bf16.mxu1 %v917_v0  ;;  %692 = vmatprep.subr.bf16.mxu0 %v810_v38 }
  0x55   :  { %744 = vmatpush3.bf16.msra.mxu1 %v809_v39  ;;  %693 = vmatpush3.bf16.msra.mxu0 %v811_v40 }
  0x56   :  { %745 = vmatprep.subr.bf16.mxu1 %v917_v0  ;;  %694 = vmatprep.subr.bf16.mxu0 %v813_v41 }
  0x59   :  { %746 = vmatpush3.bf16.msra.mxu1 %v812_v42  ;;  %695 = vmatpush3.bf16.msra.mxu0 %v814_v43 }
  0x5a   :  { %747 = vmatprep.subr.bf16.mxu1 %v917_v0  ;;  %696 = vmatprep.subr.bf16.mxu0 %v816_v45 }
  0x5d   :  { %748 = vmatpush3.bf16.msra.mxu1 %v815_v44  ;;  %697 = vmatpush3.bf16.msra.mxu0 %v817_v46 }
  0x5e   :  { %749 = vmatprep.subr.bf16.mxu1 %v917_v0  ;;  %698 = vmatprep.subr.bf16.mxu0 %v819_v48 }
  0x61   :  { %750 = vmatpush3.bf16.msra.mxu1 %v818_v47  ;;  %699 = vmatpush3.bf16.msra.mxu0 %v820_v49 }
  0x62   :  { %751 = vmatprep.subr.bf16.mxu1 %v917_v0  ;;  %700 = vmatprep.subr.bf16.mxu0 %v822_v51 }
  0x65   :  { %752 = vmatpush3.bf16.msra.mxu1 %v821_v50  ;;  %701 = vmatpush3.bf16.msra.mxu0 %v823_v52 }
 0x108   :  { %v317_v61 = vpop.f32.mrf.mxu1  ;;  %v276_v0 = vpop.f32.mrf.mxu0 }
 0x109   :  { %v318_v63 = vadd.f32 %v317_v61, %v110_v59  ;;  %v277_v1 = vadd.f32 %v276_v0, %v102_v60 }
 0x10a   :  { %v735_v2 = vpop.f32.mrf.mxu1  ;;  %v278_v4 = vpop.f32.mrf.mxu0 }
 0x10b   :  { %v325_v3 = vmul.f32 0.2, %v318_v63  ;;  %v323_v5 = vmul.f32 0.2, %v277_v1  ;;  %v279_v6 = vadd.f32 %v278_v4, %v106_v62 }
 0x10c   :  { %v320_v7 = vpop.f32.mrf.mxu1  ;;  %v280_v9 = vpop.f32.mrf.mxu0 }
 0x10d   :  { %v328_v8 = vmax.f32 %v318_v63, %v325_v3  ;;  %v324_v10 = vmul.f32 0.2, %v279_v6  ;;  %v326_v13 = vmax.f32 %v277_v1, %v323_v5 }
 0x10e   :  { %v736_v11 = vpop.f32.mrf.mxu1  ;;  %v281_v14 = vpop.f32.mrf.mxu0 }
 0x10f   :  { %v331_v12 = vpack.c.bf16 %v328_v8, %v328_v8  ;;  %v327_v15 = vmax.f32 %v279_v6, %v324_v10  ;;  %v329_v17 = vpack.c.bf16 %v326_v13, %v326_v13 }
 0x111   :  { %754 = vmatmul.mubr.bf16.vlgmr.msra.gmra.mxu1 %v331_v12  ;;  %v330_v16 = vpack.c.bf16 %v327_v15, %v327_v15 }
 0x113   :  { %563 = vmatprep.mubr.bf16.mxu0 %v330_v16 }
 0x114   :  { %564 = vmatmul.mubr.bf16.vlgmr.msra.gmra.mxu0 %v329_v17 }
 0x1d1   :  { %v605_v18 = vpop.f32.mrf.mxu1 }
 0x1d3   :  { %v755_v19 = vpop.f32.mrf.mxu1 }
 0x1d4   :  { %v702_v20 = vpop.f32.mrf.mxu0 }
 0x1d5   :  { %v608_v21 = vpop.f32.mrf.mxu1 }
 0x1d6   :  { %v703_v23 = vpop.f32.mrf.mxu0 }
 0x1d7   :  { %v756_v24 = vpop.f32.mrf.mxu1  ;;  %v704_v25 = vadd.f32 %v703_v23, %v702_v20 }
 0x1d8   :  { %v705_v26 = vpop.f32.mrf.mxu0 }
 0x1d9   :  { %v566_v27 = vadd.f32 %v704_v25, %v652_v22 }
 0x1da   :  { %v706_v28 = vpop.f32.mrf.mxu0 }
 0x1db   :  { %v606_v29 = vadd.f32 %v605_v18, %v566_v27 }
 0x1dd   :  { %611 = vst [vmem:[#allocation8] sm:$0xff] %v606_v29 }
 0x1de   :  { %895 = shalt.err (!%p892_p5)
}
 0x1df   :  { %621 = dma.vmem_to_hbm [thread:$0]  %s619_s13, 128, %s994_s5, [#allocation4]  }
 0x1e0   :  { %908 = dma.done.wait [#allocation4], 128  }
 0x1e1   :  { %909 = vsyncadd [#allocation4], 4294967168 }
 0x1e2   :  { %625 = vsyncpa [#allocation3], 1 }
 0x1e3   :  { %626 = vsyncpa [#allocation6], 1 }
 0x1e4   :  { %627 = vsyncpa [#allocation4], 1 }

</bundles_post_ra>
